<compile_context>
chip_gen: v6e
topology: v6e:2x2x1
jax: 0.10.0
libtpu: 0.0.40
codegen_flags: <defaults>
</compile_context>

<pallas_src>
import functools

import jax
import jax.numpy as jnp
import numpy as np
from jax.experimental import pallas as pl
from jax.experimental.pallas import tpu as pltpu


def _round_up(x, m):
    return ((x + m - 1) // m) * m


def _tpu_vmem_info():
    """Returns (per-core VMEM bytes, looks-like-a-2-TensorCore-chip)."""
    vmem = 128 * 1024 * 1024
    try:
        info = pltpu.get_tpu_info()
        cap = int(getattr(info, "vmem_capacity_bytes", vmem))
        if cap > 0:
            vmem = cap
    except Exception:
        pass
    # v7x exposes 64 MiB per TensorCore (2 TCs/chip); v5e/v6e expose 128 MiB.
    return vmem, vmem <= 64 * 1024 * 1024


_VMEM_BYTES, _TWO_TC = _tpu_vmem_info()


# -----------------------------------------------------------------------------
# Kernel: phased K-stream (layer 1) then N-stream (layer 2) over grid axis j.
# -----------------------------------------------------------------------------
def _cross_mlp_kernel(p_ref, g_ref, w1_ref, b1_ref, w2_ref, b2_ref,
                      o_ref, h_ref, *, num_kv, num_k):
    j = pl.program_id(1)

    # ---- layer 1 (phase j < num_k): h += x_ktile @ w1_ktile -----------------
    @pl.when(j == 0)
    def _():
        h_ref[...] = jnp.zeros_like(h_ref)

    @pl.when(j < num_k)
    def _():
        # K-tile j of the concatenated input: predictions for the first num_kv
        # tiles, gpt_preds for the rest (this IS torch.cat along dim=2).
        x_tile = jnp.where(j < num_kv, p_ref[...], g_ref[...])
        h_ref[...] += jnp.dot(x_tile, w1_ref[...],
                              preferred_element_type=jnp.float32)

    @pl.when(j == num_k - 1)
    def _():
        # bias + F.relu applied exactly once, after the last K-tile.
        h_ref[...] = jnp.maximum(h_ref[...] + b1_ref[...], 0.0)

    # ---- layer 2 (phase j >= num_k): out_ntile = relu(h) @ w2_ntile + b2 ----
    @pl.when(j >= num_k)
    def _():
        out = jnp.dot(h_ref[...].astype(w2_ref.dtype), w2_ref[...],
                      preferred_element_type=jnp.float32)
        o_ref[...] = (out + b2_ref[...]).astype(o_ref.dtype)


@functools.partial(jax.jit,
                   static_argnames=("tile_m", "compute_dtype", "out_dtype"))
def cross_gpt_mlp(predictions, gpt_preds, w1, b1, w2, b2, *,
                  tile_m=None, compute_dtype=jnp.bfloat16, out_dtype=None):
    """Fused cross / cross2 MLP: relu(cat(p, g) @ w1 + b1) @ w2 + b2.

    predictions, gpt_preds: (B, T, V)
    w1: (2V, H), b1: (H,), w2: (H, V), b2: (V,)
    returns: (B, T, V) in `out_dtype` (default: predictions.dtype)
    """
    B, T, V = predictions.shape
    K2, H = w1.shape
    assert K2 == 2 * V and w2.shape == (H, V)
    M = B * T
    out_dtype = predictions.dtype if out_dtype is None else out_dtype

    vmem_bytes, two_tc = _VMEM_BYTES, _TWO_TC

    # ---- tile sizes (lane dims multiples of 128, sublane dims of 16) --------
    H_pad = _round_up(H, 128)

    # K-tiles over each input half (predictions / gpt_preds columns).
    tile_k = min(512, _round_up(V, 128))
    V_k = _round_up(V, tile_k)
    num_kv = V_k // tile_k
    num_k = 2 * num_kv                      # layer-1 phase length (both halves)

    # N-tiles over the output / w2 columns.
    tile_n = min(_round_up(V, 128), 2048 if two_tc else 4096)
    V_n = _round_up(V, tile_n)
    num_n = V_n // tile_n

    # Row tile: bf16 sublane multiple; big single step on 1-TC chips, >=2 even
    # steps on v7x so both TensorCores get equal work on the parallel M axis.
    if tile_m is None:
        cap = 256 if two_tc else 512
        tm = min(cap, _round_up(M, 16))
        if two_tc and M > 16:
            tm = min(tm, _round_up(-(-M // 2), 16))
        tile_m = max(16, tm)
    num_m = -(-M // tile_m)
    if two_tc and num_m > 1 and num_m % 2 == 1:
        num_m += 1
    M_pad = num_m * tile_m

    # ---- pad + cast ----------------------------------------------------------
    p2d = predictions.reshape(M, V).astype(compute_dtype)
    g2d = gpt_preds.reshape(M, V).astype(compute_dtype)
    p2d = jnp.pad(p2d, ((0, M_pad - M), (0, V_k - V)))
    g2d = jnp.pad(g2d, ((0, M_pad - M), (0, V_k - V)))

    w1c = w1.astype(compute_dtype)
    w1p = jnp.pad(w1c[:V], ((0, V_k - V), (0, H_pad - H)))
    w1g = jnp.pad(w1c[V:], ((0, V_k - V), (0, H_pad - H)))
    w1c = jnp.concatenate([w1p, w1g], axis=0)               # (2*V_k, H_pad)

    w2c = jnp.pad(w2.astype(compute_dtype), ((0, H_pad - H), (0, V_n - V)))
    b1r = jnp.pad(b1.astype(jnp.float32), (0, H_pad - H)).reshape(1, H_pad)
    b2r = jnp.pad(b2.astype(jnp.float32), (0, V_n - V)).reshape(1, V_n)

    # ---- grid & specs --------------------------------------------------------
    num_j = num_k + num_n
    grid = (num_m, num_j)

    def p_map(m, j):
        return (m, jnp.minimum(j, num_kv - 1))

    def g_map(m, j):
        return (m, jnp.clip(j - num_kv, 0, num_kv - 1))

    def w1_map(m, j):
        return (jnp.minimum(j, num_k - 1), 0)

    def b1_map(m, j):
        return (0, 0)

    def w2_map(m, j):
        return (0, jnp.maximum(j - num_k, 0))

    def b2_map(m, j):
        return (0, jnp.maximum(j - num_k, 0))

    def o_map(m, j):
        return (m, jnp.maximum(j - num_k, 0))

    itemsize = jnp.dtype(compute_dtype).itemsize
    out_itemsize = jnp.dtype(out_dtype).itemsize

    # Advisory cost estimate for XLA's scheduler around the custom call.
    flops = 2 * M_pad * (2 * V_k * H_pad + H_pad * V_n)
    bytes_accessed = (2 * M_pad * V_k * itemsize                    # p, g
                      + num_m * (2 * V_k + V_n) * H_pad * itemsize  # weights/m
                      + num_m * (H_pad + V_n) * 4                   # biases
                      + M_pad * V_n * out_itemsize)                 # output
    cost = pl.CostEstimate(flops=int(flops), transcendentals=0,
                           bytes_accessed=int(bytes_accessed))

    # Generation-aware VMEM budget: ~48 MiB/TC on v7x, ~96 MiB on v5e/v6e.
    vmem_limit = int(0.75 * vmem_bytes)

    # Note: p/g could be bumped to pipeline_mode=pl.Buffered(3) on 128-MiB
    # parts at production shapes if activation DMA ever shows as the exposed
    # transfer; default double-buffering is sufficient here.
    out2d = pl.pallas_call(
        functools.partial(_cross_mlp_kernel, num_kv=num_kv, num_k=num_k),
        out_shape=jax.ShapeDtypeStruct((M_pad, V_n), out_dtype),
        grid_spec=pltpu.PrefetchScalarGridSpec(
            num_scalar_prefetch=0,
            grid=grid,
            in_specs=[
                pl.BlockSpec((tile_m, tile_k), p_map),
                pl.BlockSpec((tile_m, tile_k), g_map),
                pl.BlockSpec((tile_k, H_pad), w1_map),
                pl.BlockSpec((1, H_pad), b1_map,
                             pipeline_mode=pl.Buffered(1)),   # grid-invariant
                pl.BlockSpec((H_pad, tile_n), w2_map),
                pl.BlockSpec((1, tile_n), b2_map),
            ],
            out_specs=pl.BlockSpec((tile_m, tile_n), o_map),
            scratch_shapes=[pltpu.VMEM((tile_m, H_pad), jnp.float32)],
        ),
        compiler_params=pltpu.CompilerParams(
            dimension_semantics=("parallel", "arbitrary"),
            vmem_limit_bytes=vmem_limit),
        cost_estimate=cost,
    )(p2d, g2d, w1c, b1r, w2c, b2r)

    return out2d[:M, :V].reshape(B, T, V)


# -----------------------------------------------------------------------------
# Glue: deterministic stand-in for idxs2gpt_predictions (GPT-2 is external).
# -----------------------------------------------------------------------------
def idxs2gpt_predictions_stub(batch_idx, gpt_logit_table):
    # TODO(synk): the real module runs a pretrained GPT2LMHeadModel over the
    # decoded tokens and gathers columns at self.gpt_indexes; here we use a
    # deterministic per-token logit table with the same (B, T, V) output.
    return gpt_logit_table[batch_idx]  # (B, T, V)


# -----------------------------------------------------------------------------
# Demo
# -----------------------------------------------------------------------------
if __name__ == "__main__":
    key = jax.random.PRNGKey(0)

    # Small, module-consistent shapes.
    B = 2          # batch
    T = 8          # seq length == decode_lengths[0]
    V = 128        # voc_len = len(word_map)
    H = 1024       # self.cross = nn.Linear(voc_len * 2, 1024)

    k = jax.random.split(key, 8)

    # Parameters (nn.Linear-style init, stored transposed so y = x @ W + b).
    bound1 = 1.0 / np.sqrt(2 * V)
    w1 = jax.random.uniform(k[0], (2 * V, H), jnp.float32, -bound1, bound1)
    b1 = jax.random.uniform(k[1], (H,), jnp.float32, -bound1, bound1)
    bound2 = 1.0 / np.sqrt(H)
    w2 = jax.random.uniform(k[2], (H, V), jnp.float32, -bound2, bound2)
    b2 = jax.random.uniform(k[3], (V,), jnp.float32, -bound2, bound2)

    # Inputs.
    predictions = jax.random.normal(k[4], (B, T, V), jnp.float32)
    encoded_captions = jax.random.randint(k[5], (B, T), 0, V, jnp.int32)
    decode_lengths = [T, T]  # decode_lengths[0] == T

    # Deterministic GPT logit stand-in table (voc_len x voc_len).
    gpt_logit_table = jax.random.normal(k[6], (V, V), jnp.float32)

    # forward():
    gpt_preds = idxs2gpt_predictions_stub(
        encoded_captions[:, :decode_lengths[0]], gpt_logit_table)
    out = cross_gpt_mlp(predictions, gpt_preds, w1, b1, w2, b2)
    out = jax.block_until_ready(out)

    # Pure-JAX f32 reference of the fused MLP (bf16 MXU inputs -> relaxed tol).
    # For tighter parity with the f32 PyTorch Linears, call with
    # compute_dtype=jnp.float32.
    x = jnp.concatenate([predictions, gpt_preds], axis=2).reshape(B * T, 2 * V)
    ref = (jnp.maximum(x @ w1 + b1, 0.0) @ w2 + b2).reshape(B, T, V)
    np.testing.assert_allclose(np.asarray(out), np.asarray(ref),
                               rtol=3e-2, atol=3e-2)

    print("KERNEL_OK")
</pallas_src>

<mosaic_0001>
module attributes {stable_mosaic.version = 11 : i64} {
  func.func @_cross_mlp_kernel(%arg0: i32, %arg1: i32, %arg2: memref<16x128xbf16, #tpu.memory_space<vmem>>, %arg3: memref<16x128xbf16, #tpu.memory_space<vmem>>, %arg4: memref<128x1024xbf16, #tpu.memory_space<vmem>>, %arg5: memref<1x1024xf32, #tpu.memory_space<vmem>>, %arg6: memref<1024x128xbf16, #tpu.memory_space<vmem>>, %arg7: memref<1x128xf32, #tpu.memory_space<vmem>>, %arg8: memref<16x128xf32, #tpu.memory_space<vmem>>, %arg9: memref<16x1024xf32, #tpu.memory_space<vmem>>) attributes {dimension_semantics = [#tpu.dimension_semantics<parallel>, #tpu.dimension_semantics<arbitrary>], iteration_bounds = array<i64: 1, 3>, scalar_prefetch = 0 : i64, scratch_operands = 1 : i64, tpu.core_type = #tpu.core_type<tc>, window_params = [{transform_indices = @transform_0, window_bounds = array<i64: 16, 128>}, {transform_indices = @transform_1, window_bounds = array<i64: 16, 128>}, {transform_indices = @transform_2, window_bounds = array<i64: 128, 1024>}, {pipeline_mode = #tpu.pipeline_mode<synchronous>, transform_indices = @transform_3, window_bounds = array<i64: 1, 1024>}, {transform_indices = @transform_4, window_bounds = array<i64: 1024, 128>}, {transform_indices = @transform_5, window_bounds = array<i64: 1, 128>}, {transform_indices = @transform_6, window_bounds = array<i64: 16, 128>}]} {
    %c0_i32 = arith.constant 0 : i32
    %0 = arith.cmpi eq, %arg1, %c0_i32 : i32
    %1 = arith.extui %0 : i1 to i32
    %c0_i32_0 = arith.constant 0 : i32
    %2 = arith.cmpi ne, %1, %c0_i32_0 : i32
    scf.if %2 {
      %cst = arith.constant 0.000000e+00 : f32
      %12 = vector.broadcast %cst : f32 to vector<16x1024xf32>
      %c0 = arith.constant 0 : index
      %c0_5 = arith.constant 0 : index
      %13 = vector.load %arg9[%c0, %c0_5] : memref<16x1024xf32, #tpu.memory_space<vmem>>, vector<16x1024xf32>
      tpu.vector_store %arg9[%c0, %c0_5], %12 {strides = array<i32>} : memref<16x1024xf32, #tpu.memory_space<vmem>>, vector<16x1024xf32>,
    } else {
    }
    %c2_i32 = arith.constant 2 : i32
    %3 = arith.cmpi slt, %arg1, %c2_i32 : i32
    %4 = arith.extui %3 : i1 to i32
    %c0_i32_1 = arith.constant 0 : i32
    %5 = arith.cmpi ne, %4, %c0_i32_1 : i32
    scf.if %5 {
      %c1_i32_5 = arith.constant 1 : i32
      %12 = arith.cmpi slt, %arg1, %c1_i32_5 : i32
      %c0 = arith.constant 0 : index
      %c0_6 = arith.constant 0 : index
      %13 = vector.load %arg2[%c0, %c0_6] : memref<16x128xbf16, #tpu.memory_space<vmem>>, vector<16x128xbf16>
      %c0_7 = arith.constant 0 : index
      %c0_8 = arith.constant 0 : index
      %14 = vector.load %arg3[%c0_7, %c0_8] : memref<16x128xbf16, #tpu.memory_space<vmem>>, vector<16x128xbf16>
      %15 = arith.select %12, %13, %14 : vector<16x128xbf16>
      %c0_9 = arith.constant 0 : index
      %c0_10 = arith.constant 0 : index
      %16 = vector.load %arg9[%c0_9, %c0_10] : memref<16x1024xf32, #tpu.memory_space<vmem>>, vector<16x1024xf32>
      %c0_11 = arith.constant 0 : index
      %c0_12 = arith.constant 0 : index
      %17 = vector.load %arg4[%c0_11, %c0_12] : memref<128x1024xbf16, #tpu.memory_space<vmem>>, vector<128x1024xbf16>
      %cst = arith.constant dense<0.000000e+00> : vector<16x1024xf32>
      %18 = tpu.matmul %15, %17, %cst {dimension_numbers = #tpu.dot_dimension_numbers<[1], [0], [0], [1], [0, 0, 1, 1], [], []>} : vector<16x128xbf16>, vector<128x1024xbf16>, vector<16x1024xf32> -> vector<16x1024xf32>
      %19 = arith.addf %16, %18 : vector<16x1024xf32>
      %c0_13 = arith.constant 0 : index
      %c0_14 = arith.constant 0 : index
      %20 = vector.load %arg9[%c0_13, %c0_14] : memref<16x1024xf32, #tpu.memory_space<vmem>>, vector<16x1024xf32>
      tpu.vector_store %arg9[%c0_13, %c0_14], %19 {strides = array<i32>} : memref<16x1024xf32, #tpu.memory_space<vmem>>, vector<16x1024xf32>,
    } else {
    }
    %c1_i32 = arith.constant 1 : i32
    %6 = arith.cmpi eq, %arg1, %c1_i32 : i32
    %7 = arith.extui %6 : i1 to i32
    %c0_i32_2 = arith.constant 0 : i32
    %8 = arith.cmpi ne, %7, %c0_i32_2 : i32
    scf.if %8 {
      %c0 = arith.constant 0 : index
      %c0_5 = arith.constant 0 : index
      %12 = vector.load %arg9[%c0, %c0_5] : memref<16x1024xf32, #tpu.memory_space<vmem>>, vector<16x1024xf32>
      %c0_6 = arith.constant 0 : index
      %c0_7 = arith.constant 0 : index
      %13 = vector.load %arg5[%c0_6, %c0_7] : memref<1x1024xf32, #tpu.memory_space<vmem>>, vector<1x1024xf32>
      %14 = vector.broadcast %13 : vector<1x1024xf32> to vector<16x1024xf32>
      %15 = arith.addf %12, %14 : vector<16x1024xf32>
      %cst = arith.constant 0.000000e+00 : f32
      %16 = vector.broadcast %cst : f32 to vector<16x1024xf32>
      %17 = arith.maximumf %15, %16 : vector<16x1024xf32>
      %c0_8 = arith.constant 0 : index
      %c0_9 = arith.constant 0 : index
      %18 = vector.load %arg9[%c0_8, %c0_9] : memref<16x1024xf32, #tpu.memory_space<vmem>>, vector<16x1024xf32>
      tpu.vector_store %arg9[%c0_8, %c0_9], %17 {strides = array<i32>} : memref<16x1024xf32, #tpu.memory_space<vmem>>, vector<16x1024xf32>,
    } else {
    }
    %c2_i32_3 = arith.constant 2 : i32
    %9 = arith.cmpi sge, %arg1, %c2_i32_3 : i32
    %10 = arith.extui %9 : i1 to i32
    %c0_i32_4 = arith.constant 0 : i32
    %11 = arith.cmpi ne, %10, %c0_i32_4 : i32
    scf.if %11 {
      %c0 = arith.constant 0 : index
      %c0_5 = arith.constant 0 : index
      %12 = vector.load %arg9[%c0, %c0_5] : memref<16x1024xf32, #tpu.memory_space<vmem>>, vector<16x1024xf32>
      %13 = arith.truncf %12 : vector<16x1024xf32> to vector<16x1024xbf16>
      %c0_6 = arith.constant 0 : index
      %c0_7 = arith.constant 0 : index
      %14 = vector.load %arg6[%c0_6, %c0_7] : memref<1024x128xbf16, #tpu.memory_space<vmem>>, vector<1024x128xbf16>
      %cst = arith.constant dense<0.000000e+00> : vector<16x128xf32>
      %15 = tpu.matmul %13, %14, %cst {dimension_numbers = #tpu.dot_dimension_numbers<[1], [0], [0], [1], [0, 0, 1, 1], [], []>} : vector<16x1024xbf16>, vector<1024x128xbf16>, vector<16x128xf32> -> vector<16x128xf32>
      %c0_8 = arith.constant 0 : index
      %c0_9 = arith.constant 0 : index
      %16 = vector.load %arg7[%c0_8, %c0_9] : memref<1x128xf32, #tpu.memory_space<vmem>>, vector<1x128xf32>
      %17 = vector.broadcast %16 : vector<1x128xf32> to vector<16x128xf32>
      %18 = arith.addf %15, %17 : vector<16x128xf32>
      %c0_10 = arith.constant 0 : index
      %c0_11 = arith.constant 0 : index
      %19 = vector.load %arg8[%c0_10, %c0_11] : memref<16x128xf32, #tpu.memory_space<vmem>>, vector<16x128xf32>
      tpu.vector_store %arg8[%c0_10, %c0_11], %18 {strides = array<i32>} : memref<16x128xf32, #tpu.memory_space<vmem>>, vector<16x128xf32>,
    } else {
    }
    return
  }
  func.func @transform_0(%arg0: i32, %arg1: i32) -> (i32, i32) {
    %c0_i32 = arith.constant 0 : i32
    %0 = arith.minsi %arg1, %c0_i32 : i32
    %c0_i32_0 = arith.constant 0 : i32
    return %arg0, %0 : i32, i32
  }
  func.func @transform_1(%arg0: i32, %arg1: i32) -> (i32, i32) {
    %c1_i32 = arith.constant 1 : i32
    %0 = arith.subi %arg1, %c1_i32 : i32
    %c0_i32 = arith.constant 0 : i32
    %c0_i32_0 = arith.constant 0 : i32
    %1 = arith.maxsi %c0_i32, %0 : i32
    %2 = arith.minsi %c0_i32_0, %1 : i32
    %c0_i32_1 = arith.constant 0 : i32
    return %arg0, %2 : i32, i32
  }
  func.func @transform_2(%arg0: i32, %arg1: i32) -> (i32, i32) {
    %c1_i32 = arith.constant 1 : i32
    %0 = arith.minsi %arg1, %c1_i32 : i32
    %c0_i32 = arith.constant 0 : i32
    %c0_i32_0 = arith.constant 0 : i32
    return %0, %c0_i32 : i32, i32
  }
  func.func @transform_3(%arg0: i32, %arg1: i32) -> (i32, i32) {
    %c0_i32 = arith.constant 0 : i32
    %c0_i32_0 = arith.constant 0 : i32
    %c0_i32_1 = arith.constant 0 : i32
    return %c0_i32, %c0_i32_0 : i32, i32
  }
  func.func @transform_4(%arg0: i32, %arg1: i32) -> (i32, i32) {
    %c2_i32 = arith.constant 2 : i32
    %0 = arith.subi %arg1, %c2_i32 : i32
    %c0_i32 = arith.constant 0 : i32
    %1 = arith.maxsi %0, %c0_i32 : i32
    %c0_i32_0 = arith.constant 0 : i32
    %c0_i32_1 = arith.constant 0 : i32
    return %c0_i32_0, %1 : i32, i32
  }
  func.func @transform_5(%arg0: i32, %arg1: i32) -> (i32, i32) {
    %c2_i32 = arith.constant 2 : i32
    %0 = arith.subi %arg1, %c2_i32 : i32
    %c0_i32 = arith.constant 0 : i32
    %1 = arith.maxsi %0, %c0_i32 : i32
    %c0_i32_0 = arith.constant 0 : i32
    %c0_i32_1 = arith.constant 0 : i32
    return %c0_i32_0, %1 : i32, i32
  }
  func.func @transform_6(%arg0: i32, %arg1: i32) -> (i32, i32) {
    %c2_i32 = arith.constant 2 : i32
    %0 = arith.subi %arg1, %c2_i32 : i32
    %c0_i32 = arith.constant 0 : i32
    %1 = arith.maxsi %0, %c0_i32 : i32
    %c0_i32_0 = arith.constant 0 : i32
    return %arg0, %1 : i32, i32
  }
}

</mosaic_0001>

<bundles_post_ra>
// kernel: cross_gpt_mlp.1
= control target key start
LH: loop header
LB: loop body
LE: loop exit
PB: predicated region body
PF: predicated region fallthrough
CT: control target
= control target key end

     0   :  { %11 = vsyncpa [#allocation4], 0  ;;  %s3019_s0 = inlined_call_operand.vmem [shape: bf16[16,128], index: 0, kind: input, shape index: {}]   ;;  %s3020_s1 = inlined_call_operand.vmem [shape: bf16[16,128], index: 1, kind: input, shape index: {}]   ;;  %s3021_s2 = inlined_call_operand.vmem [shape: bf16[256,1024], index: 2, kind: input, shape index: {}]   ;;  %s3022_s3 = inlined_call_operand.vmem [shape: f32[1,1024], index: 3, kind: input, shape index: {}]   ;;  %s3023_s4 = inlined_call_operand.vmem [shape: bf16[1024,128], index: 4, kind: input, shape index: {}]   ;;  %s3024_s5 = inlined_call_operand.vmem [shape: f32[1,128], index: 5, kind: input, shape index: {}]   ;;  %s3025_s6 = inlined_call_operand.hbm [shape: f32[16,128], index: 6, kind: output, shape index: {}]  }
   0x1   :  { %13 = vsyncpa [#allocation4 + $0x1], 0  ;;  %s2607_s21 = smov 0   ;;  %s2609_s22 = smov 0  }
   0x2   :  { %s2611_s23 = smov 0   ;;  %s2613_s24 = smov 0  }
   0x3   :  { %s2615_s25 = smov 0  }
   0x4 LB: > { %s2090_s26 = sadd.s32 4294967295, %s2565_s25   ;;  %s2091_s27 = sadd.s32 4294967294, %s2565_s25   ;;  %s2565_s25 = sphi %s2615_s25, %s19_s25   ;;  %s2561_s24 = sphi %s2613_s24, %s3032_s24   ;;  %s2557_s23 = sphi %s2611_s23, %s3031_s23   ;;  %s2553_s22 = sphi %s2609_s22, %s3009_s22   ;;  %s2549_s21 = sphi %s2607_s21, %s3030_s21  }
   0x5   : > { %s28_s28 = sadd.s32 1, %s2561_s24  ;;  %p2546_p1 = scmp.ne.s32.totalorder %s2553_s22, 0 }
   0x6   : > { %p29_p0 = scmp.ge.s32.totalorder %s28_s28, 3  ;;  %p242_p2 = scmp.eq.s32.totalorder %s2090_s26, 2 }
   0x7   : > { %p247_p3 = scmp.ne.s32.totalorder %s2553_s22, %s2549_s21  ;;  %p248_p5 = scmp.eq.s32.totalorder %s2091_s27, 2 }
   0x8   : > { %s3034_s28 = smov (%p29_p0, %s28_s28), 0  ;;  %p2640_p4 = por %p2546_p1, %p242_p2 }
   0x9   : > { %p2644_p6 = por %p248_p5, %p247_p3  ;;  %p2112_p7 = scmp.ge.s32.totalorder %s2565_s25, 1 }
   0xa   : > { %p346_p8 = scmp.lt.s32.totalorder %s2565_s25, 4 }
   0xc   : > { %p347_p9 = pnand %p2112_p7, %p346_p8 }
   0xd   : > { %s412_s7 = sand.u32 (!%p347_p9), 1, %s2553_s22   ;;  %p415_p10 = scmp.lt.s32.totalorder (!%p347_p9), %s2557_s23, 0 }
   0xe   : > { %350 = sbr.rel (%p347_p9) target bundleno = 647 (0x287), region = 44  ;;  %s2113_s8 = sshll.u32 (!%p347_p9), %s412_s7, 4 }
   0xf   : > { %p447_p11 = scmp.lt.s32.totalorder (!%p347_p9), %s2557_s23, 1  ;;  %s2669_s20 = scalar_lea.vmem (!%p347_p9), [#allocation3], %s2113_s8 }
  0x10   : > { %p2141_p13 = scmp.ne.s32.totalorder (!%p347_p9), %s2557_s23, 0 }
  0x13   : > { %s416_s9 = scalar_select %p415_p10, %s2557_s23, 0 }
  0x14   : > { %s448_s10 = scalar_select %p447_p11, %s2557_s23, 1 }
  0x15   : > { %s3036_s9 = smov (!%p415_p10, %s416_s9), 0 }
  0x16   : > { %s2125_s11 = sshll.u32 %s448_s10, 4  ;;  %s2117_s12 = sshll.u32 %s3036_s9, 2 }
  0x17   : > { %p450_p12 = scmp.lt.s32.totalorder %s2125_s11, 31  ;;  %s2662_s15 = scalar_lea.vmem %s3019_s0, %s2117_s12 }
  0x18   : > { %485 = sbr.rel (%p2141_p13) target bundleno = 38 (0x26), region = 48 }
  0x19   : > { %s3038_s11 = smov (!%p450_p12, %s2125_s11), 31 }
  0x1a   : > { %s2280_s16 = sshll.u32 %s3038_s11, 5 }
  0x1b   : > { %s2667_s19 = scalar_lea.vmem %s3021_s2, %s2280_s16 }
  0x1d   : > { %v2567_v0 = vmov 0.0  }
  0x1e   : > { %486 = vst [vmem:[#allocation2 + $0x30] sm:$0xff] %v2567_v0  ;;  %487 = vst [vmem:[#allocation2] sm:$0xff] %v2567_v0 }
  0x1f   : > { %488 = vst [vmem:[#allocation2 + $0x58] sm:$0xff] %v2567_v0  ;;  %489 = vst [vmem:[#allocation2 + $0x18] sm:$0xff] %v2567_v0 }
  0x20   : > { %490 = vst [vmem:[#allocation2 + $0x50] sm:$0xff] %v2567_v0  ;;  %491 = vst [vmem:[#allocation2 + $0x68] sm:$0xff] %v2567_v0 }
  0x21   : > { %492 = vst [vmem:[#allocation2 + $0x8] sm:$0xff] %v2567_v0  ;;  %493 = vst [vmem:[#allocation2 + $0x48] sm:$0xff] %v2567_v0 }
  0x22   : > { %494 = vst [vmem:[#allocation2 + $0x40] sm:$0xff] %v2567_v0  ;;  %495 = vst [vmem:[#allocation2 + $0x20] sm:$0xff] %v2567_v0 }
  0x23   : > { %496 = vst [vmem:[#allocation2 + $0x10] sm:$0xff] %v2567_v0  ;;  %497 = vst [vmem:[#allocation2 + $0x38] sm:$0xff] %v2567_v0 }
  0x24   : > { %498 = vst [vmem:[#allocation2 + $0x60] sm:$0xff] %v2567_v0  ;;  %499 = vst [vmem:[#allocation2 + $0x70] sm:$0xff] %v2567_v0 }
  0x25   : > { %500 = vst [vmem:[#allocation2 + $0x78] sm:$0xff] %v2567_v0  ;;  %501 = vst [vmem:[#allocation2 + $0x28] sm:$0xff] %v2567_v0 }
  0x26 PF: > { %p2142_p0 = scmp.ge.s32.totalorder %s2557_s23, 2 }
  0x28   : > { %505 = sbr.rel (%p2142_p0) target bundleno = 315 (0x13b), region = 52 }
  0x2d   : > { %v588_v1 = vld [vmem:[%s2667_s19 + $0x1c0] sm:$0xff]  ;;  %v589_v3 = vld [vmem:[%s2667_s19 + $0x1c8] sm:$0xff]  ;;  %v2568_v9 = vmov 0   ;;  %s511_s26 = scalar_select %p447_p11, 1, 0 }
  0x2e   : > { %v592_v2 = vld [vmem:[%s2667_s19 + $0x1e0] sm:$0xff]  ;;  %v593_v5 = vld [vmem:[%s2667_s19 + $0x1e8] sm:$0xff]  ;;  %954 = vmatprep.mubr.bf16.mxu0 %v2568_v9  ;;  %997 = vmatprep.mubr.bf16.mxu1 %v2568_v9 }
  0x2f   : > { %v2201_v4 = vcombine.high %v588_v1, %v592_v2  ;;  %v2200_v6 = vcombine.low %v588_v1, %v592_v2  ;;  %v580_v7 = vld [vmem:[%s2667_s19 + $0x180] sm:$0xff]  ;;  %v2203_v10 = vcombine.high %v589_v3, %v593_v5  ;;  %v2202_v11 = vcombine.low %v589_v3, %v593_v5  ;;  %v581_v13 = vld [vmem:[%s2667_s19 + $0x188] sm:$0xff] }
  0x30   : > { %v584_v8 = vld [vmem:[%s2667_s19 + $0x1a0] sm:$0xff]  ;;  %v585_v14 = vld [vmem:[%s2667_s19 + $0x1a8] sm:$0xff]  ;;  %v512_v55 = vstv %s511_s26 }
  0x31   : > { %v2193_v12 = vcombine.high %v580_v7, %v584_v8  ;;  %v572_v15 = vld [vmem:[%s2667_s19 + $0x140] sm:$0xff]  ;;  %922 = vmatprep.subr.bf16.mxu0 %v2201_v4  ;;  %v2195_v16 = vcombine.high %v581_v13, %v585_v14  ;;  %v573_v18 = vld [vmem:[%s2667_s19 + $0x148] sm:$0xff]  ;;  %965 = vmatprep.subr.bf16.mxu1 %v2203_v10  ;;  %v2192_v20 = vcombine.low %v580_v7, %v584_v8  ;;  %vm2710_vm0 = vcmp.eq.s32.totalorder %v512_v55, 1  ;;  %v594_v7 = vld [vmem:[%s2667_s19 + $0x1f0] sm:$0xff] }
  0x32   : > { %v576_v17 = vld [vmem:[%s2667_s19 + $0x160] sm:$0xff]  ;;  %v577_v19 = vld [vmem:[%s2667_s19 + $0x168] sm:$0xff]  ;;  %923 = vmatpush1.bf16.msra.mxu0 %v2200_v6  ;;  %966 = vmatpush1.bf16.msra.mxu1 %v2202_v11  ;;  %v2194_v21 = vcombine.low %v581_v13, %v585_v14  ;;  %v590_v6 = vld [vmem:[%s2667_s19 + $0x1d0] sm:$0xff] }
  0x33   : > { %924 = vmatprep.subr.bf16.mxu0 %v2193_v12  ;;  %v2185_v22 = vcombine.high %v572_v15, %v576_v17  ;;  %967 = vmatprep.subr.bf16.mxu1 %v2195_v16  ;;  %v2187_v23 = vcombine.high %v573_v18, %v577_v19  ;;  %v564_v24 = vld [vmem:[%s2667_s19 + $0x100] sm:$0xff]  ;;  %v565_v26 = vld [vmem:[%s2667_s19 + $0x108] sm:$0xff]  ;;  %v2184_v28 = vcombine.low %v572_v15, %v576_v17  ;;  %v591_v8 = vld [vmem:[%s2667_s19 + $0x1d8] sm:$0xff] }
  0x34   : > { %v568_v25 = vld [vmem:[%s2667_s19 + $0x120] sm:$0xff]  ;;  %v569_v27 = vld [vmem:[%s2667_s19 + $0x128] sm:$0xff]  ;;  %v2186_v29 = vcombine.low %v573_v18, %v577_v19  ;;  %v595_v10 = vld [vmem:[%s2667_s19 + $0x1f8] sm:$0xff]  ;;  %v2205_v15 = vcombine.high %v590_v6, %v594_v7 }
  0x35   : > { %v2177_v30 = vcombine.high %v564_v24, %v568_v25  ;;  %v2179_v31 = vcombine.high %v565_v26, %v569_v27  ;;  %v556_v32 = vld [vmem:[%s2667_s19 + $0xc0] sm:$0xff]  ;;  %v557_v34 = vld [vmem:[%s2667_s19 + $0xc8] sm:$0xff]  ;;  %v2176_v36 = vcombine.low %v564_v24, %v568_v25  ;;  %v2178_v37 = vcombine.low %v565_v26, %v569_v27  ;;  %v582_v17 = vld [vmem:[%s2667_s19 + $0x190] sm:$0xff] }
  0x36   : > { %925 = vmatpush1.bf16.msra.mxu0 %v2192_v20  ;;  %968 = vmatpush1.bf16.msra.mxu1 %v2194_v21  ;;  %v560_v33 = vld [vmem:[%s2667_s19 + $0xe0] sm:$0xff]  ;;  %v561_v35 = vld [vmem:[%s2667_s19 + $0xe8] sm:$0xff]  ;;  %v2207_v16 = vcombine.high %v591_v8, %v595_v10  ;;  %v586_v18 = vld [vmem:[%s2667_s19 + $0x1b0] sm:$0xff] }
  0x37   : > { %926 = vmatprep.subr.bf16.mxu0 %v2185_v22  ;;  %969 = vmatprep.subr.bf16.mxu1 %v2187_v23  ;;  %v2169_v38 = vcombine.high %v556_v32, %v560_v33  ;;  %v2171_v39 = vcombine.high %v557_v34, %v561_v35  ;;  %v548_v40 = vld [vmem:[%s2667_s19 + $0x80] sm:$0xff]  ;;  %v549_v42 = vld [vmem:[%s2667_s19 + $0x88] sm:$0xff]  ;;  %v2168_v44 = vcombine.low %v556_v32, %v560_v33  ;;  %v583_v20 = vld [vmem:[%s2667_s19 + $0x198] sm:$0xff] }
  0x38   : > { %v552_v41 = vld [vmem:[%s2667_s19 + $0xa0] sm:$0xff]  ;;  %v553_v43 = vld [vmem:[%s2667_s19 + $0xa8] sm:$0xff]  ;;  %v2170_v45 = vcombine.low %v557_v34, %v561_v35  ;;  %v587_v21 = vld [vmem:[%s2667_s19 + $0x1b8] sm:$0xff]  ;;  %v2204_v22 = vcombine.low %v590_v6, %v594_v7  ;;  %v2206_v23 = vcombine.low %v591_v8, %v595_v10  ;;  %v2197_v24 = vcombine.high %v582_v17, %v586_v18 }
  0x39   : > { %v2161_v46 = vcombine.high %v548_v40, %v552_v41  ;;  %v2163_v47 = vcombine.high %v549_v42, %v553_v43  ;;  %v540_v48 = vld [vmem:[%s2667_s19 + $0x40] sm:$0xff]  ;;  %v541_v50 = vld [vmem:[%s2667_s19 + $0x48] sm:$0xff]  ;;  %v2160_v52 = vcombine.low %v548_v40, %v552_v41  ;;  %v2162_v53 = vcombine.low %v549_v42, %v553_v43  ;;  %v574_v26 = vld [vmem:[%s2667_s19 + $0x150] sm:$0xff] }
  0x3a   : > { %927 = vmatpush1.bf16.msra.mxu0 %v2184_v28  ;;  %970 = vmatpush1.bf16.msra.mxu1 %v2186_v29  ;;  %v544_v49 = vld [vmem:[%s2667_s19 + $0x60] sm:$0xff]  ;;  %v545_v51 = vld [vmem:[%s2667_s19 + $0x68] sm:$0xff]  ;;  %v2199_v25 = vcombine.high %v583_v20, %v587_v21  ;;  %v578_v27 = vld [vmem:[%s2667_s19 + $0x170] sm:$0xff] }
  0x3b   : > { %928 = vmatprep.subr.bf16.mxu0 %v2177_v30  ;;  %971 = vmatprep.subr.bf16.mxu1 %v2179_v31  ;;  %v2153_v54 = vcombine.high %v540_v48, %v544_v49  ;;  %v2155_v56 = vcombine.high %v541_v50, %v545_v51  ;;  %v532_v57 = vld [vmem:[%s2667_s19] sm:$0xff]  ;;  %v533_v59 = vld [vmem:[%s2667_s19 + $0x8] sm:$0xff]  ;;  %v2152_v61 = vcombine.low %v540_v48, %v544_v49  ;;  %v575_v28 = vld [vmem:[%s2667_s19 + $0x158] sm:$0xff] }
  0x3c   : > { %v536_v58 = vld [vmem:[%s2667_s19 + $0x20] sm:$0xff]  ;;  %v537_v60 = vld [vmem:[%s2667_s19 + $0x28] sm:$0xff]  ;;  %v2154_v0 = vcombine.low %v541_v50, %v545_v51  ;;  %v579_v29 = vld [vmem:[%s2667_s19 + $0x178] sm:$0xff]  ;;  %v2196_v30 = vcombine.low %v582_v17, %v586_v18  ;;  %v2198_v31 = vcombine.low %v583_v20, %v587_v21  ;;  %v2189_v32 = vcombine.high %v574_v26, %v578_v27 }
  0x3d   : > { %v507_v62 = vld [vmem:[%s2662_s15] sm:$0xf]  ;;  %v2145_v1 = vcombine.high %v532_v57, %v536_v58  ;;  %v508_v2 = vld [vmem:[%s2662_s15 + $0x4] sm:$0xf]  ;;  %v2147_v5 = vcombine.high %v533_v59, %v537_v60  ;;  %v2144_v11 = vcombine.low %v532_v57, %v536_v58  ;;  %v2146_v14 = vcombine.low %v533_v59, %v537_v60  ;;  %v566_v34 = vld [vmem:[%s2667_s19 + $0x110] sm:$0xff] }
  0x3e   : > { %929 = vmatpush1.bf16.msra.mxu0 %v2176_v36  ;;  %972 = vmatpush1.bf16.msra.mxu1 %v2178_v37  ;;  %v509_v3 = vld [vmem:[%s3020_s1] sm:$0xf]  ;;  %v510_v4 = vld [vmem:[%s3020_s1 + $0x4] sm:$0xf]  ;;  %v2191_v33 = vcombine.high %v575_v28, %v579_v29  ;;  %v570_v35 = vld [vmem:[%s2667_s19 + $0x130] sm:$0xff] }
  0x3f   : > { %930 = vmatprep.subr.bf16.mxu0 %v2169_v38  ;;  %973 = vmatprep.subr.bf16.mxu1 %v2171_v39  ;;  %v514_v12 = vsel %vm2710_vm0, %v507_v62, %v509_v3  ;;  %v515_v13 = vsel %vm2710_vm0, %v508_v2, %v510_v4  ;;  %v567_v36 = vld [vmem:[%s2667_s19 + $0x118] sm:$0xff]  ;;  %v2188_v38 = vcombine.low %v574_v26, %v578_v27  ;;  %v558_v42 = vld [vmem:[%s2667_s19 + $0xd0] sm:$0xff] }
  0x40   : > { %v2731_v19 = vcombine.low %v514_v12, %v515_v13  ;;  %v571_v37 = vld [vmem:[%s2667_s19 + $0x138] sm:$0xff]  ;;  %v2190_v39 = vcombine.low %v575_v28, %v579_v29  ;;  %v2181_v40 = vcombine.high %v566_v34, %v570_v35  ;;  %v562_v43 = vld [vmem:[%s2667_s19 + $0xf0] sm:$0xff]  ;;  %v525_v28 = vld [vmem:[#allocation2 + $0x20] sm:$0xff] }
  0x41   : > { %v2183_v41 = vcombine.high %v567_v36, %v571_v37  ;;  %v550_v49 = vld [vmem:[%s2667_s19 + $0x90] sm:$0xff]  ;;  %v551_v51 = vld [vmem:[%s2667_s19 + $0x98] sm:$0xff] }
  0x42   : > { %931 = vmatpush1.bf16.msra.mxu0 %v2168_v44  ;;  %974 = vmatpush1.bf16.msra.mxu1 %v2170_v45  ;;  %v559_v44 = vld [vmem:[%s2667_s19 + $0xd8] sm:$0xff]  ;;  %v554_v50 = vld [vmem:[%s2667_s19 + $0xb0] sm:$0xff] }
  0x43   : > { %932 = vmatprep.subr.bf16.mxu0 %v2161_v46  ;;  %975 = vmatprep.subr.bf16.mxu1 %v2163_v47  ;;  %v563_v45 = vld [vmem:[%s2667_s19 + $0xf8] sm:$0xff]  ;;  %v2180_v46 = vcombine.low %v566_v34, %v570_v35  ;;  %v2173_v47 = vcombine.high %v558_v42, %v562_v43  ;;  %v2165_v55 = vcombine.high %v550_v49, %v554_v50  ;;  %v542_v57 = vld [vmem:[%s2667_s19 + $0x50] sm:$0xff] }
  0x44   : > { %v2175_v48 = vcombine.high %v559_v44, %v563_v45  ;;  %v546_v58 = vld [vmem:[%s2667_s19 + $0x70] sm:$0xff]  ;;  %v543_v59 = vld [vmem:[%s2667_s19 + $0x58] sm:$0xff] }
  0x45   : > { %v547_v60 = vld [vmem:[%s2667_s19 + $0x78] sm:$0xff]  ;;  %v2157_v63 = vcombine.high %v542_v57, %v546_v58  ;;  %v538_v2 = vld [vmem:[%s2667_s19 + $0x30] sm:$0xff] }
  0x46   : > { %933 = vmatpush1.bf16.msra.mxu0 %v2160_v52  ;;  %976 = vmatpush1.bf16.msra.mxu1 %v2162_v53  ;;  %v555_v52 = vld [vmem:[%s2667_s19 + $0xb8] sm:$0xff]  ;;  %v2172_v53 = vcombine.low %v558_v42, %v562_v43  ;;  %v2158_v6 = vcombine.low %v543_v59, %v547_v60  ;;  %v516_v12 = vld [vmem:[#allocation2 + $0x30] sm:$0xff]  ;;  %v523_v42 = vld [vmem:[#allocation2 + $0x48] sm:$0xff] }
  0x47   : > { %934 = vmatprep.subr.bf16.mxu0 %v2153_v54  ;;  %977 = vmatprep.subr.bf16.mxu1 %v2155_v56  ;;  %v2174_v54 = vcombine.low %v559_v44, %v563_v45  ;;  %v2167_v56 = vcombine.high %v551_v51, %v555_v52  ;;  %v2166_v62 = vcombine.low %v551_v51, %v555_v52  ;;  %v535_v3 = vld [vmem:[%s2667_s19 + $0x18] sm:$0xff]  ;;  %v528_v45 = vld [vmem:[#allocation2 + $0x60] sm:$0xff] }
  0x48   : > { %v539_v4 = vld [vmem:[%s2667_s19 + $0x38] sm:$0xff] }
  0x49   : > { %v2151_v8 = vcombine.high %v535_v3, %v539_v4  ;;  %v518_v13 = vld [vmem:[#allocation2 + $0x58] sm:$0xff] }
  0x4a   : > { %935 = vmatpush1.bf16.msra.mxu0 %v2152_v61  ;;  %978 = vmatpush1.bf16.msra.mxu1 %v2154_v0  ;;  %v2164_v61 = vcombine.low %v550_v49, %v554_v50  ;;  %v2159_v0 = vcombine.high %v543_v59, %v547_v60  ;;  %v519_v18 = vld [vmem:[#allocation2 + $0x18] sm:$0xff]  ;;  %v529_v50 = vld [vmem:[#allocation2 + $0x70] sm:$0xff] }
  0x4b   : > { %936 = vmatprep.subr.bf16.mxu0 %v2145_v1  ;;  %979 = vmatprep.subr.bf16.mxu1 %v2147_v5  ;;  %v534_v1 = vld [vmem:[%s2667_s19 + $0x10] sm:$0xff]  ;;  %v2156_v5 = vcombine.low %v542_v57, %v546_v58 }
  0x4c   : > { %v2149_v7 = vcombine.high %v534_v1, %v538_v2  ;;  %v2148_v10 = vcombine.low %v534_v1, %v538_v2 }
  0x4e   : > { %937 = vmatpush1.bf16.msra.mxu0 %v2144_v11  ;;  %980 = vmatpush1.bf16.msra.mxu1 %v2146_v14  ;;  %v2150_v11 = vcombine.low %v535_v3, %v539_v4 }
  0x4f   : > { %1008 = vmatprep.subr.bf16.mxu0 %v2205_v15  ;;  %1051 = vmatprep.subr.bf16.mxu1 %v2207_v16  ;;  %v517_v15 = vld [vmem:[#allocation2] sm:$0xff] }
  0x51   : > { %955 = vmatmul.mubr.bf16.vlgmr.msra.gmra.mxu0 %v2731_v19  ;;  %998 = vmatmul.mubr.bf16.vlgmr.msra.gmra.mxu1 %v2731_v19 }
  0x52   : > { %1009 = vmatpush1.bf16.msra.mxu0 %v2204_v22  ;;  %1052 = vmatpush1.bf16.msra.mxu1 %v2206_v23  ;;  %v524_v22 = vld [vmem:[#allocation2 + $0x40] sm:$0xff] }
  0x53   : > { %1010 = vmatprep.subr.bf16.mxu0 %v2197_v24  ;;  %1053 = vmatprep.subr.bf16.mxu1 %v2199_v25  ;;  %v526_v25 = vld [vmem:[#allocation2 + $0x10] sm:$0xff] }
  0x54   : > { %1040 = vmatprep.mubr.bf16.mxu0 %v2568_v9  ;;  %1083 = vmatprep.mubr.bf16.mxu1 %v2568_v9  ;;  %v2182_v9 = vcombine.low %v567_v36, %v571_v37  ;;  %v520_v36 = vld [vmem:[#allocation2 + $0x50] sm:$0xff]  ;;  %v522_v37 = vld [vmem:[#allocation2 + $0x8] sm:$0xff] }
  0x56   : > { %1011 = vmatpush1.bf16.msra.mxu0 %v2196_v30  ;;  %1054 = vmatpush1.bf16.msra.mxu1 %v2198_v31  ;;  %v527_v30 = vld [vmem:[#allocation2 + $0x38] sm:$0xff] }
  0x57   : > { %1012 = vmatprep.subr.bf16.mxu0 %v2189_v32  ;;  %1055 = vmatprep.subr.bf16.mxu1 %v2191_v33 }
  0x5a   : > { %1013 = vmatpush1.bf16.msra.mxu0 %v2188_v38  ;;  %1056 = vmatpush1.bf16.msra.mxu1 %v2190_v39  ;;  %v521_v39 = vld [vmem:[#allocation2 + $0x68] sm:$0xff] }
  0x5b   : > { %1014 = vmatprep.subr.bf16.mxu0 %v2181_v40  ;;  %1057 = vmatprep.subr.bf16.mxu1 %v2183_v41 }
  0x5e   : > { %1015 = vmatpush1.bf16.msra.mxu0 %v2180_v46  ;;  %1058 = vmatpush1.bf16.msra.mxu1 %v2182_v9 }
  0x5f   : > { %1016 = vmatprep.subr.bf16.mxu0 %v2173_v47  ;;  %1059 = vmatprep.subr.bf16.mxu1 %v2175_v48  ;;  %v530_v47 = vld [vmem:[#allocation2 + $0x78] sm:$0xff] }
  0x62   : > { %1017 = vmatpush1.bf16.msra.mxu0 %v2172_v53  ;;  %1060 = vmatpush1.bf16.msra.mxu1 %v2174_v54  ;;  %v531_v53 = vld [vmem:[#allocation2 + $0x28] sm:$0xff] }
  0x63   : > { %1018 = vmatprep.subr.bf16.mxu0 %v2165_v55  ;;  %1061 = vmatprep.subr.bf16.mxu1 %v2167_v56 }
  0x66   : > { %1019 = vmatpush1.bf16.msra.mxu0 %v2164_v61  ;;  %1062 = vmatpush1.bf16.msra.mxu1 %v2166_v62 }
  0x67   : > { %1020 = vmatprep.subr.bf16.mxu0 %v2157_v63  ;;  %1063 = vmatprep.subr.bf16.mxu1 %v2159_v0 }
  0x6a   : > { %1021 = vmatpush1.bf16.msra.mxu0 %v2156_v5  ;;  %1064 = vmatpush1.bf16.msra.mxu1 %v2158_v6 }
  0x6b   : > { %1022 = vmatprep.subr.bf16.mxu0 %v2149_v7  ;;  %1065 = vmatprep.subr.bf16.mxu1 %v2151_v8 }
  0x6e   : > { %1023 = vmatpush1.bf16.msra.mxu0 %v2148_v10  ;;  %1066 = vmatpush1.bf16.msra.mxu1 %v2150_v11 }
  0x71   : > { %1041 = vmatmul.mubr.bf16.vlgmr.msra.gmra.mxu0 %v2731_v19  ;;  %1084 = vmatmul.mubr.bf16.vlgmr.msra.gmra.mxu1 %v2731_v19 }
 0x111   : > { %v956_v14 = vpop.f32.mrf.mxu0  ;;  %v999_v17 = vpop.f32.mrf.mxu1 }
 0x112   : > { %v1094_v16 = vadd.f32 %v956_v14, %v516_v12  ;;  %v1096_v20 = vadd.f32 %v999_v17, %v518_v13 }
 0x113   : > { %v958_v21 = vpop.f32.mrf.mxu0  ;;  %v1001_v24 = vpop.f32.mrf.mxu1 }
 0x114   : > { %1110 = vst [vmem:[#allocation2 + $0x30] sm:$0xff] %v1094_v16  ;;  %v1095_v23 = vadd.f32 %v958_v21, %v517_v15  ;;  %1112 = vst [vmem:[#allocation2 + $0x58] sm:$0xff] %v1096_v20  ;;  %v1097_v26 = vadd.f32 %v1001_v24, %v519_v18 }
 0x115   : > { %v960_v27 = vpop.f32.mrf.mxu0  ;;  %v1003_v29 = vpop.f32.mrf.mxu1 }
 0x116   : > { %1111 = vst [vmem:[#allocation2] sm:$0xff] %v1095_v23  ;;  %v1102_v19 = vadd.f32 %v960_v27, %v524_v22  ;;  %1113 = vst [vmem:[#allocation2 + $0x18] sm:$0xff] %v1097_v26  ;;  %v1104_v31 = vadd.f32 %v1003_v29, %v526_v25 }
 0x117   : > { %v962_v32 = vpop.f32.mrf.mxu0  ;;  %v1005_v34 = vpop.f32.mrf.mxu1 }
 0x118   : > { %1118 = vst [vmem:[#allocation2 + $0x40] sm:$0xff] %v1102_v19  ;;  %v1103_v33 = vadd.f32 %v962_v32, %v525_v28  ;;  %1120 = vst [vmem:[#allocation2 + $0x10] sm:$0xff] %v1104_v31  ;;  %v1105_v35 = vadd.f32 %v1005_v34, %v527_v30 }
 0x11a   : > { %1119 = vst [vmem:[#allocation2 + $0x20] sm:$0xff] %v1103_v33  ;;  %1121 = vst [vmem:[#allocation2 + $0x38] sm:$0xff] %v1105_v35 }
 0x131   : > { %v1042_v38 = vpop.f32.mrf.mxu0  ;;  %v1085_v41 = vpop.f32.mrf.mxu1 }
 0x132   : > { %v1098_v40 = vadd.f32 %v1042_v38, %v520_v36  ;;  %v1100_v43 = vadd.f32 %v1085_v41, %v522_v37 }
 0x133   : > { %v1044_v44 = vpop.f32.mrf.mxu0  ;;  %v1087_v9 = vpop.f32.mrf.mxu1 }
 0x134   : > { %1114 = vst [vmem:[#allocation2 + $0x50] sm:$0xff] %v1098_v40  ;;  %v1099_v46 = vadd.f32 %v1044_v44, %v521_v39  ;;  %1116 = vst [vmem:[#allocation2 + $0x8] sm:$0xff] %v1100_v43  ;;  %v1101_v48 = vadd.f32 %v1087_v9, %v523_v42 }
 0x135   : > { %v1046_v49 = vpop.f32.mrf.mxu0  ;;  %v1089_v52 = vpop.f32.mrf.mxu1 }
 0x136   : > { %1115 = vst [vmem:[#allocation2 + $0x68] sm:$0xff] %v1099_v46  ;;  %v1106_v51 = vadd.f32 %v1046_v49, %v528_v45  ;;  %1117 = vst [vmem:[#allocation2 + $0x48] sm:$0xff] %v1101_v48  ;;  %v1108_v54 = vadd.f32 %v1089_v52, %v530_v47 }
 0x137   : > { %v1048_v55 = vpop.f32.mrf.mxu0  ;;  %v1091_v57 = vpop.f32.mrf.mxu1 }
 0x138   : > { %1122 = vst [vmem:[#allocation2 + $0x60] sm:$0xff] %v1106_v51  ;;  %v1107_v56 = vadd.f32 %v1048_v55, %v529_v50  ;;  %1124 = vst [vmem:[#allocation2 + $0x78] sm:$0xff] %v1108_v54  ;;  %v1109_v58 = vadd.f32 %v1091_v57, %v531_v53 }
 0x13a   : > { %1123 = vst [vmem:[#allocation2 + $0x70] sm:$0xff] %v1107_v56  ;;  %1125 = vst [vmem:[#allocation2 + $0x28] sm:$0xff] %v1109_v58 }
 0x13b PF: > { %p2208_p1 = scmp.ne.s32.totalorder %s2557_s23, 1 }
 0x13d   : > { %1129 = sbr.rel (%p2208_p1) target bundleno = 342 (0x156), region = 56 }
 0x142   : > { %v1148_v59 = vlaneseq  ;;  %v1130_v61 = vld [vmem:[#allocation2 + $0x30] sm:$0xff]  ;;  %v1146_v62 = vld [vmem:[%s3022_s3] sm:$0xff]  ;;  %v1132_v2 = vld [vmem:[#allocation2 + $0x58] sm:$0xff] }
 0x143   : > { %v1131_v0 = vld [vmem:[#allocation2] sm:$0xff]  ;;  %v1133_v5 = vld [vmem:[#allocation2 + $0x18] sm:$0xff]  ;;  %v1134_v6 = vld [vmem:[#allocation2 + $0x50] sm:$0xff] }
 0x144   : > { %v1149_v60 = vshrl.u32 %v1148_v59, 7  ;;  %v1135_v16 = vld [vmem:[#allocation2 + $0x68] sm:$0xff]  ;;  %v1138_v28 = vld [vmem:[#allocation2 + $0x40] sm:$0xff]  ;;  %v1140_v29 = vld [vmem:[#allocation2 + $0x10] sm:$0xff] }
 0x145   : > { %v1136_v17 = vld [vmem:[#allocation2 + $0x8] sm:$0xff]  ;;  %v1139_v19 = vld [vmem:[#allocation2 + $0x20] sm:$0xff]  ;;  %v1141_v34 = vld [vmem:[#allocation2 + $0x38] sm:$0xff] }
 0x146   : > { %v1150_v63 = vsub.s32 0, %v1149_v60  ;;  %v1154_v1 = vsub.s32 1, %v1149_v60  ;;  %v1158_v3 = vsub.s32 2, %v1149_v60  ;;  %v1162_v4 = vsub.s32 3, %v1149_v60  ;;  %v1137_v18 = vld [vmem:[#allocation2 + $0x48] sm:$0xff]  ;;  %v1142_v35 = vld [vmem:[#allocation2 + $0x60] sm:$0xff] }
 0x147   : > { %v1166_v7 = vsub.s32 4, %v1149_v60  ;;  %v1170_v8 = vsub.s32 5, %v1149_v60  ;;  %v1174_v10 = vsub.s32 6, %v1149_v60  ;;  %v1178_v11 = vsub.s32 7, %v1149_v60  ;;  %v1143_v36 = vld [vmem:[#allocation2 + $0x70] sm:$0xff]  ;;  %v1144_v41 = vld [vmem:[#allocation2 + $0x78] sm:$0xff] }
 0x148   : > { %v1151_v12 = vrot.slane %v1146_v62, %v1150_v63  ;;  %v1155_v13 = vrot.slane %v1146_v62, %v1154_v1  ;;  %v1159_v14 = vrot.slane %v1146_v62, %v1158_v3  ;;  %v1163_v15 = vrot.slane %v1146_v62, %v1162_v4  ;;  %v1145_v42 = vld [vmem:[#allocation2 + $0x28] sm:$0xff] }
 0x149   : > { %v1167_v20 = vrot.slane %v1146_v62, %v1166_v7  ;;  %v1171_v21 = vrot.slane %v1146_v62, %v1170_v8  ;;  %v1175_v22 = vrot.slane %v1146_v62, %v1174_v10  ;;  %v1179_v23 = vrot.slane %v1146_v62, %v1178_v11 }
 0x14a   : > { %v1188_v24 = vadd.f32 %v1151_v12, %v1130_v61  ;;  %v1189_v25 = vadd.f32 %v1155_v13, %v1131_v0  ;;  %v1190_v26 = vadd.f32 %v1159_v14, %v1132_v2  ;;  %v1191_v27 = vadd.f32 %v1163_v15, %v1133_v5 }
 0x14b   : > { %v1192_v30 = vadd.f32 %v1167_v20, %v1134_v6  ;;  %v1193_v31 = vadd.f32 %v1171_v21, %v1135_v16  ;;  %v1194_v32 = vadd.f32 %v1175_v22, %v1136_v17  ;;  %v1195_v33 = vadd.f32 %v1179_v23, %v1137_v18 }
 0x14c   : > { %v1204_v37 = vmax.f32 %v1188_v24, 0.0  ;;  %v1205_v38 = vmax.f32 %v1189_v25, 0.0  ;;  %v1206_v39 = vmax.f32 %v1190_v26, 0.0  ;;  %v1207_v40 = vmax.f32 %v1191_v27, 0.0 }
 0x14d   : > { %v1208_v43 = vmax.f32 %v1192_v30, 0.0  ;;  %v1209_v44 = vmax.f32 %v1193_v31, 0.0  ;;  %v1210_v45 = vmax.f32 %v1194_v32, 0.0  ;;  %v1211_v46 = vmax.f32 %v1195_v33, 0.0 }
 0x14e   : > { %1220 = vst [vmem:[#allocation2 + $0x30] sm:$0xff] %v1204_v37  ;;  %1221 = vst [vmem:[#allocation2] sm:$0xff] %v1205_v38  ;;  %v1196_v9 = vadd.f32 %v1151_v12, %v1138_v28  ;;  %v1197_v47 = vadd.f32 %v1155_v13, %v1139_v19  ;;  %v1198_v48 = vadd.f32 %v1159_v14, %v1140_v29 }
 0x14f   : > { %1222 = vst [vmem:[#allocation2 + $0x58] sm:$0xff] %v1206_v39  ;;  %1223 = vst [vmem:[#allocation2 + $0x18] sm:$0xff] %v1207_v40  ;;  %v1199_v49 = vadd.f32 %v1163_v15, %v1141_v34  ;;  %v1200_v50 = vadd.f32 %v1167_v20, %v1142_v35  ;;  %v1201_v51 = vadd.f32 %v1171_v21, %v1143_v36 }
 0x150   : > { %1224 = vst [vmem:[#allocation2 + $0x50] sm:$0xff] %v1208_v43  ;;  %1225 = vst [vmem:[#allocation2 + $0x68] sm:$0xff] %v1209_v44  ;;  %v1202_v52 = vadd.f32 %v1175_v22, %v1144_v41  ;;  %v1203_v53 = vadd.f32 %v1179_v23, %v1145_v42  ;;  %v1212_v54 = vmax.f32 %v1196_v9, 0.0  ;;  %v1213_v55 = vmax.f32 %v1197_v47, 0.0 }
 0x151   : > { %1226 = vst [vmem:[#allocation2 + $0x8] sm:$0xff] %v1210_v45  ;;  %1227 = vst [vmem:[#allocation2 + $0x48] sm:$0xff] %v1211_v46  ;;  %v1214_v56 = vmax.f32 %v1198_v48, 0.0  ;;  %v1215_v57 = vmax.f32 %v1199_v49, 0.0  ;;  %v1216_v58 = vmax.f32 %v1200_v50, 0.0  ;;  %v1217_v59 = vmax.f32 %v1201_v51, 0.0 }
 0x152   : > { %v1218_v60 = vmax.f32 %v1202_v52, 0.0  ;;  %v1219_v61 = vmax.f32 %v1203_v53, 0.0  ;;  %1228 = vst [vmem:[#allocation2 + $0x40] sm:$0xff] %v1212_v54  ;;  %1229 = vst [vmem:[#allocation2 + $0x20] sm:$0xff] %v1213_v55 }
 0x153   : > { %1230 = vst [vmem:[#allocation2 + $0x10] sm:$0xff] %v1214_v56  ;;  %1231 = vst [vmem:[#allocation2 + $0x38] sm:$0xff] %v1215_v57 }
 0x154   : > { %1232 = vst [vmem:[#allocation2 + $0x60] sm:$0xff] %v1216_v58  ;;  %1233 = vst [vmem:[#allocation2 + $0x70] sm:$0xff] %v1217_v59 }
 0x155   : > { %1234 = vst [vmem:[#allocation2 + $0x78] sm:$0xff] %v1218_v60  ;;  %1235 = vst [vmem:[#allocation2 + $0x28] sm:$0xff] %v1219_v61 }
 0x156 PF: > { %p2209_p2 = scmp.lt.s32.totalorder %s2557_s23, 2 }
 0x158   : > { %1239 = sbr.rel (%p2209_p2) target bundleno = 621 (0x26d), region = 60 }
 0x15d   : > { %v2428_v62 = vld [vmem:[%s3023_s4 + $0x78] sm:$0xff]   ;;  %v2432_v2 = vld [vmem:[%s3023_s4 + $0x70] sm:$0xff]   ;;  %v2436_v6 = vld [vmem:[%s3023_s4 + $0x68] sm:$0xff]  }
 0x15e   : > { %v2429_v63 = vld [vmem:[%s3023_s4 + $0xf8] sm:$0xff]   ;;  %2281 = vmatprep.subr.bf16.mxu0 %v2428_v62  ;;  %v2433_v3 = vld [vmem:[%s3023_s4 + $0xf0] sm:$0xff]   ;;  %v2437_v7 = vld [vmem:[%s3023_s4 + $0xe8] sm:$0xff]  }
 0x15f   : > { %v2430_v0 = vld [vmem:[%s3023_s4 + $0x38] sm:$0xff]   ;;  %2303 = vmatprep.subr.bf16.mxu1 %v2429_v63  ;;  %v2434_v4 = vld [vmem:[%s3023_s4 + $0x30] sm:$0xff]   ;;  %v2438_v8 = vld [vmem:[%s3023_s4 + $0x28] sm:$0xff]  }
 0x160   : > { %v2431_v1 = vld [vmem:[%s3023_s4 + $0xb8] sm:$0xff]   ;;  %2282 = vmatpush3.bf16.msra.mxu0 %v2430_v0  ;;  %v2435_v5 = vld [vmem:[%s3023_s4 + $0xb0] sm:$0xff]   ;;  %v2439_v10 = vld [vmem:[%s3023_s4 + $0xa8] sm:$0xff]  }
 0x161   : > { %2304 = vmatpush3.bf16.msra.mxu1 %v2431_v1  ;;  %2283 = vmatprep.subr.bf16.mxu0 %v2432_v2  ;;  %v2440_v11 = vld [vmem:[%s3023_s4 + $0x60] sm:$0xff]   ;;  %v2444_v15 = vld [vmem:[%s3023_s4 + $0x58] sm:$0xff]   ;;  %v2448_v20 = vld [vmem:[%s3023_s4 + $0x50] sm:$0xff]  }
 0x162   : > { %2305 = vmatprep.subr.bf16.mxu1 %v2433_v3  ;;  %v2441_v12 = vld [vmem:[%s3023_s4 + $0xe0] sm:$0xff]   ;;  %v2445_v16 = vld [vmem:[%s3023_s4 + $0xd8] sm:$0xff]   ;;  %v2449_v21 = vld [vmem:[%s3023_s4 + $0xd0] sm:$0xff]  }
 0x163   : > { %v2442_v13 = vld [vmem:[%s3023_s4 + $0x20] sm:$0xff]   ;;  %v2446_v17 = vld [vmem:[%s3023_s4 + $0x18] sm:$0xff]   ;;  %v2450_v22 = vld [vmem:[%s3023_s4 + $0x10] sm:$0xff]  }
 0x164   : > { %2284 = vmatpush3.bf16.msra.mxu0 %v2434_v4  ;;  %v2443_v14 = vld [vmem:[%s3023_s4 + $0xa0] sm:$0xff]   ;;  %v2447_v18 = vld [vmem:[%s3023_s4 + $0x98] sm:$0xff]   ;;  %v2451_v23 = vld [vmem:[%s3023_s4 + $0x90] sm:$0xff]  }
 0x165   : > { %2306 = vmatpush3.bf16.msra.mxu1 %v2435_v5  ;;  %2285 = vmatprep.subr.bf16.mxu0 %v2436_v6  ;;  %v2452_v24 = vld [vmem:[%s3023_s4 + $0x48] sm:$0xff]   ;;  %v2456_v28 = vld [vmem:[%s3023_s4 + $0x40] sm:$0xff]   ;;  %v1243_v33 = vld [vmem:[#allocation2 + $0x18] sm:$0xff] }
 0x166   : > { %2307 = vmatprep.subr.bf16.mxu1 %v2437_v7  ;;  %v2453_v25 = vld [vmem:[%s3023_s4 + $0xc8] sm:$0xff]   ;;  %v2457_v19 = vld [vmem:[%s3023_s4 + $0xc0] sm:$0xff]   ;;  %v1251_v35 = vld [vmem:[#allocation2 + $0x38] sm:$0xff] }
 0x167   : > { %v2454_v26 = vld [vmem:[%s3023_s4 + $0x8] sm:$0xff]   ;;  %v2458_v29 = vld [vmem:[%s3023_s4] sm:$0xff]   ;;  %v1240_v36 = vld [vmem:[#allocation2 + $0x30] sm:$0xff]  ;;  %v1259_v38 = vpack.c.bf16 %v1251_v35, %v1243_v33 }
 0x168   : > { %2286 = vmatpush3.bf16.msra.mxu0 %v2438_v8  ;;  %v2455_v27 = vld [vmem:[%s3023_s4 + $0x88] sm:$0xff]   ;;  %v2459_v30 = vld [vmem:[%s3023_s4 + $0x80] sm:$0xff]   ;;  %v1242_v40 = vld [vmem:[#allocation2 + $0x58] sm:$0xff] }
 0x169   : > { %2308 = vmatpush3.bf16.msra.mxu1 %v2439_v10  ;;  %2287 = vmatprep.subr.bf16.mxu0 %v2440_v11  ;;  %v1241_v31 = vld [vmem:[#allocation2] sm:$0xff]  ;;  %v1250_v41 = vld [vmem:[#allocation2 + $0x10] sm:$0xff]  ;;  %v2460_v43 = vld [vmem:[%s3023_s4 + $0x178] sm:$0xff]  }
 0x16a   : > { %2309 = vmatprep.subr.bf16.mxu1 %v2441_v12  ;;  %v1249_v32 = vld [vmem:[#allocation2 + $0x20] sm:$0xff]  ;;  %v1258_v42 = vpack.c.bf16 %v1250_v41, %v1242_v40  ;;  %1856 = vmatprep.mubr.bf16.mxu1 %v1259_v38  ;;  %v2461_v44 = vld [vmem:[%s3023_s4 + $0x1f8] sm:$0xff]   ;;  %v2464_v9 = vld [vmem:[%s3023_s4 + $0x170] sm:$0xff]  }
 0x16b   : > { %v1257_v34 = vpack.c.bf16 %v1249_v32, %v1241_v31  ;;  %v1248_v37 = vld [vmem:[#allocation2 + $0x40] sm:$0xff]  ;;  %v2462_v45 = vld [vmem:[%s3023_s4 + $0x138] sm:$0xff]   ;;  %v2465_v47 = vld [vmem:[%s3023_s4 + $0x1f0] sm:$0xff]  }
 0x16c   : > { %2288 = vmatpush3.bf16.msra.mxu0 %v2442_v13  ;;  %v1256_v39 = vpack.c.bf16 %v1248_v37, %v1240_v36  ;;  %v2463_v46 = vld [vmem:[%s3023_s4 + $0x1b8] sm:$0xff]   ;;  %v2466_v48 = vld [vmem:[%s3023_s4 + $0x130] sm:$0xff]   ;;  %v2468_v50 = vld [vmem:[%s3023_s4 + $0x168] sm:$0xff]  }
 0x16d   : > { %2310 = vmatpush3.bf16.msra.mxu1 %v2443_v14  ;;  %2289 = vmatprep.subr.bf16.mxu0 %v2444_v15  ;;  %v2467_v49 = vld [vmem:[%s3023_s4 + $0x1b0] sm:$0xff]   ;;  %v2469_v51 = vld [vmem:[%s3023_s4 + $0x1e8] sm:$0xff]   ;;  %v2472_v54 = vld [vmem:[%s3023_s4 + $0x160] sm:$0xff]  }
 0x16e   : > { %2311 = vmatprep.subr.bf16.mxu1 %v2445_v16  ;;  %1815 = vmatprep.mubr.bf16.mxu0 %v1257_v34  ;;  %v2470_v52 = vld [vmem:[%s3023_s4 + $0x128] sm:$0xff]   ;;  %v2473_v55 = vld [vmem:[%s3023_s4 + $0x1e0] sm:$0xff]   ;;  %v2476_v58 = vld [vmem:[%s3023_s4 + $0x158] sm:$0xff]  }
 0x16f   : > { %v2471_v53 = vld [vmem:[%s3023_s4 + $0x1a8] sm:$0xff]   ;;  %v2474_v56 = vld [vmem:[%s3023_s4 + $0x120] sm:$0xff]   ;;  %v2477_v59 = vld [vmem:[%s3023_s4 + $0x1d8] sm:$0xff]  }
 0x170   : > { %2290 = vmatpush3.bf16.msra.mxu0 %v2446_v17  ;;  %v2475_v57 = vld [vmem:[%s3023_s4 + $0x1a0] sm:$0xff]   ;;  %v2478_v60 = vld [vmem:[%s3023_s4 + $0x118] sm:$0xff]   ;;  %v2480_v62 = vld [vmem:[%s3023_s4 + $0x150] sm:$0xff]  }
 0x171   : > { %2312 = vmatpush3.bf16.msra.mxu1 %v2447_v18  ;;  %2291 = vmatprep.subr.bf16.mxu0 %v2448_v20  ;;  %v2479_v61 = vld [vmem:[%s3023_s4 + $0x198] sm:$0xff]   ;;  %v2481_v63 = vld [vmem:[%s3023_s4 + $0x1d0] sm:$0xff]   ;;  %v2484_v2 = vld [vmem:[%s3023_s4 + $0x148] sm:$0xff]  }
 0x172   : > { %2313 = vmatprep.subr.bf16.mxu1 %v2449_v21  ;;  %v2482_v0 = vld [vmem:[%s3023_s4 + $0x110] sm:$0xff]   ;;  %v2485_v3 = vld [vmem:[%s3023_s4 + $0x1c8] sm:$0xff]   ;;  %v2488_v6 = vld [vmem:[%s3023_s4 + $0x140] sm:$0xff]  }
 0x173   : > { %v2483_v1 = vld [vmem:[%s3023_s4 + $0x190] sm:$0xff]   ;;  %v2486_v4 = vld [vmem:[%s3023_s4 + $0x108] sm:$0xff]   ;;  %v2489_v7 = vld [vmem:[%s3023_s4 + $0x1c0] sm:$0xff]  }
 0x174   : > { %2292 = vmatpush3.bf16.msra.mxu0 %v2450_v22  ;;  %v2487_v5 = vld [vmem:[%s3023_s4 + $0x188] sm:$0xff]   ;;  %v2490_v8 = vld [vmem:[%s3023_s4 + $0x100] sm:$0xff]   ;;  %v1253_v12 = vld [vmem:[#allocation2 + $0x70] sm:$0xff] }
 0x175   : > { %2314 = vmatpush3.bf16.msra.mxu1 %v2451_v23  ;;  %2293 = vmatprep.subr.bf16.mxu0 %v2452_v24  ;;  %v2491_v10 = vld [vmem:[%s3023_s4 + $0x180] sm:$0xff]   ;;  %v1245_v11 = vld [vmem:[#allocation2 + $0x68] sm:$0xff]  ;;  %v1244_v17 = vld [vmem:[#allocation2 + $0x50] sm:$0xff] }
 0x176   : > { %2315 = vmatprep.subr.bf16.mxu1 %v2453_v25  ;;  %v1247_v13 = vld [vmem:[#allocation2 + $0x48] sm:$0xff]  ;;  %v1261_v15 = vpack.c.bf16 %v1253_v12, %v1245_v11  ;;  %v1252_v18 = vld [vmem:[#allocation2 + $0x60] sm:$0xff]  ;;  %v1254_v22 = vld [vmem:[#allocation2 + $0x78] sm:$0xff] }
 0x177   : > { %v1255_v14 = vld [vmem:[#allocation2 + $0x28] sm:$0xff]  ;;  %v1260_v21 = vpack.c.bf16 %v1252_v18, %v1244_v17 }
 0x178   : > { %2294 = vmatpush3.bf16.msra.mxu0 %v2454_v26  ;;  %v1263_v16 = vpack.c.bf16 %v1255_v14, %v1247_v13  ;;  %v1246_v20 = vld [vmem:[#allocation2 + $0x8] sm:$0xff] }
 0x179   : > { %2316 = vmatpush3.bf16.msra.mxu1 %v2455_v27  ;;  %2295 = vmatprep.subr.bf16.mxu0 %v2456_v28  ;;  %v1262_v23 = vpack.c.bf16 %v1254_v22, %v1246_v20 }
 0x17a   : > { %2317 = vmatprep.subr.bf16.mxu1 %v2457_v19 }
 0x17c   : > { %2296 = vmatpush3.bf16.msra.mxu0 %v2458_v29 }
 0x17d   : > { %2318 = vmatpush3.bf16.msra.mxu1 %v2459_v30  ;;  %2325 = vmatprep.subr.bf16.mxu0 %v2460_v43  ;;  %v2210_v30 = vld [vmem:[%s3024_s5] ss:$0 sm:$0xff] }
 0x17e   : > { %2347 = vmatprep.subr.bf16.mxu1 %v2461_v44 }
 0x17f   : > { %1816 = vmatmul.mubr.bf16.vlgmr.msra.gmra.mxu0 %v1256_v39 }
 0x180   : > { %1857 = vmatmul.mubr.bf16.vlgmr.msra.gmra.mxu1 %v1258_v42  ;;  %2326 = vmatpush3.bf16.msra.mxu0 %v2462_v45 }
 0x181   : > { %2348 = vmatpush3.bf16.msra.mxu1 %v2463_v46  ;;  %2327 = vmatprep.subr.bf16.mxu0 %v2464_v9 }
 0x182   : > { %2349 = vmatprep.subr.bf16.mxu1 %v2465_v47  ;;  %1897 = vmatprep.mubr.bf16.mxu0 %v1261_v15 }
 0x183   : > { %1938 = vmatprep.mubr.bf16.mxu1 %v1263_v16 }
 0x184   : > { %2328 = vmatpush3.bf16.msra.mxu0 %v2466_v48 }
 0x185   : > { %2350 = vmatpush3.bf16.msra.mxu1 %v2467_v49  ;;  %2329 = vmatprep.subr.bf16.mxu0 %v2468_v50 }
 0x186   : > { %2351 = vmatprep.subr.bf16.mxu1 %v2469_v51 }
 0x188   : > { %2330 = vmatpush3.bf16.msra.mxu0 %v2470_v52 }
 0x189   : > { %2352 = vmatpush3.bf16.msra.mxu1 %v2471_v53  ;;  %2331 = vmatprep.subr.bf16.mxu0 %v2472_v54 }
 0x18a   : > { %2353 = vmatprep.subr.bf16.mxu1 %v2473_v55 }
 0x18c   : > { %2332 = vmatpush3.bf16.msra.mxu0 %v2474_v56 }
 0x18d   : > { %2354 = vmatpush3.bf16.msra.mxu1 %v2475_v57  ;;  %2333 = vmatprep.subr.bf16.mxu0 %v2476_v58 }
 0x18e   : > { %2355 = vmatprep.subr.bf16.mxu1 %v2477_v59 }
 0x190   : > { %2334 = vmatpush3.bf16.msra.mxu0 %v2478_v60 }
 0x191   : > { %2356 = vmatpush3.bf16.msra.mxu1 %v2479_v61  ;;  %2335 = vmatprep.subr.bf16.mxu0 %v2480_v62 }
 0x192   : > { %2357 = vmatprep.subr.bf16.mxu1 %v2481_v63 }
 0x194   : > { %2336 = vmatpush3.bf16.msra.mxu0 %v2482_v0 }
 0x195   : > { %2358 = vmatpush3.bf16.msra.mxu1 %v2483_v1  ;;  %2337 = vmatprep.subr.bf16.mxu0 %v2484_v2 }
 0x196   : > { %2359 = vmatprep.subr.bf16.mxu1 %v2485_v3 }
 0x198   : > { %2338 = vmatpush3.bf16.msra.mxu0 %v2486_v4 }
 0x199   : > { %2360 = vmatpush3.bf16.msra.mxu1 %v2487_v5  ;;  %2339 = vmatprep.subr.bf16.mxu0 %v2488_v6 }
 0x19a   : > { %2361 = vmatprep.subr.bf16.mxu1 %v2489_v7 }
 0x19c   : > { %2340 = vmatpush3.bf16.msra.mxu0 %v2490_v8 }
 0x19d   : > { %2362 = vmatpush3.bf16.msra.mxu1 %v2491_v10 }
 0x19f   : > { %1898 = vmatmul.mubr.bf16.vlgmr.msra.gmra.mxu0 %v1260_v21 }
 0x1a0   : > { %1939 = vmatmul.mubr.bf16.vlgmr.msra.gmra.mxu1 %v1262_v23 }
 0x23f   : > { %v2297_v24 = vpop.f32.mrf.mxu0 }
 0x240   : > { %v2319_v25 = vpop.f32.mrf.mxu1 }
 0x241   : > { %v2298_v26 = vpop.f32.mrf.mxu0 }
 0x242   : > { %v2320_v27 = vpop.f32.mrf.mxu1  ;;  %v2299_v19 = vadd.f32 %v2298_v26, %v2297_v24 }
 0x243   : > { %v2300_v28 = vpop.f32.mrf.mxu0  ;;  %v2321_v33 = vadd.f32 %v2320_v27, %v2319_v25 }
 0x244   : > { %v2322_v29 = vpop.f32.mrf.mxu1  ;;  %v1818_v32 = vadd.f32 %v2299_v19, %v2210_v30 }
 0x245   : > { %v2301_v31 = vpop.f32.mrf.mxu0 }
 0x246   : > { %v2302_v34 = vadd.f32 %v2301_v31, %v2300_v28  ;;  %v2323_v35 = vpop.f32.mrf.mxu1  ;;  %v1859_v39 = vadd.f32 %v2321_v33, %v1818_v32 }
 0x247   : > { %v2324_v44 = vadd.f32 %v2323_v35, %v2322_v29 }
 0x248   : > { %v1821_v40 = vadd.f32 %v2302_v34, %v2210_v30 }
 0x24a   : > { %v1862_v48 = vadd.f32 %v2324_v44, %v1821_v40 }
 0x25f   : > { %v2341_v36 = vpop.f32.mrf.mxu0 }
 0x260   : > { %v2363_v37 = vpop.f32.mrf.mxu1 }
 0x261   : > { %v2342_v38 = vpop.f32.mrf.mxu0 }
 0x262   : > { %v2343_v41 = vadd.f32 %v2342_v38, %v2341_v36  ;;  %v2364_v42 = vpop.f32.mrf.mxu1 }
 0x263   : > { %v2344_v43 = vpop.f32.mrf.mxu0  ;;  %v2365_v46 = vadd.f32 %v2364_v42, %v2363_v37 }
 0x264   : > { %v1900_v45 = vadd.f32 %v2343_v41, %v1859_v39  ;;  %v2366_v9 = vpop.f32.mrf.mxu1 }
 0x265   : > { %v2345_v47 = vpop.f32.mrf.mxu0 }
 0x266   : > { %v1941_v49 = vadd.f32 %v2365_v46, %v1900_v45  ;;  %v2346_v50 = vadd.f32 %v2345_v47, %v2344_v43  ;;  %v2367_v51 = vpop.f32.mrf.mxu1 }
 0x267   : > { %v2368_v53 = vadd.f32 %v2367_v51, %v2366_v9 }
 0x268   : > { %1947 = vst [vmem:[%s2669_s20] sm:$0xff] %v1941_v49  ;;  %v1903_v52 = vadd.f32 %v2346_v50, %v1862_v48 }
 0x26a   : > { %v1944_v54 = vadd.f32 %v2368_v53, %v1903_v52 }
 0x26c   : > { %1948 = vst [vmem:[%s2669_s20 + $0x8] sm:$0xff] %v1944_v54 }
 0x26d PF: > { %s2276_s17 = sadd.s32 4294967294, %s2557_s23  ;;  %s1967_s18 = sshll.u32 %s2669_s20, 4  ;;  %s2969_s18 = int_to_ptr.vmem [resolvable:$true] %s1967_s18 }
 0x26e   : > { %p1958_p3 = scmp.gt.s32.totalorder %s2276_s17, 0  ;;  %s2978_s9 = scalar_lea.sflag [#allocation4], %s412_s7 }
 0x26f   : > { %s2492_s10 = scalar_lea.vmem %s2969_s18, 256  ;;  %s2569_s23 = smov [#allocation3]  }
 0x270   : > { %s3040_s17 = smov (!%p1958_p3, %s2276_s17), 0  ;;  %p2493_p5 = scmp.ne.s32.totalorder %s2969_s18, %s2492_s10 }
 0x271   : > { %s2277_s19 = sshll.u32 %s3040_s17, 7  ;;  %s2496_s20 = sshll.u32 %s2569_s23, 4  ;;  %s2497_s20 = int_to_ptr.vmem [resolvable:$false] %s2496_s20 }
 0x272   : > { %s2974_s8 = scalar_lea.hbm %s3025_s6, %s2277_s19  ;;  %p2494_p7 = pnand %p2493_p5, %p2640_p4 }
 0x273   : > { %s2498_s11 = scalar_lea.vmem %s2497_s20, 512  ;;  %p2499_p9 = scmp.lt.s32.totalorder %s2969_s18, %s2497_s20 }
 0x274   : > { %p2495_p8 = pneg %p2494_p7  ;;  %p2500_p10 = scmp.lt.s32.totalorder %s2498_s11, %s2492_s10 }
 0x276   : > { %p2501_p11 = por %p2500_p10, %p2499_p9 }
 0x278   : > { %p2502_p12 = pnand %p2501_p11, %p2495_p8 }
 0x27a   : > { %2505 = shalt.err (!%p2502_p12)
}
 0x27b   : > { %s2506_s7 = scalar_lea.hbm %s2974_s8, 256  ;;  %s2510_s14 = scalar_lea.hbm %s3025_s6, 256 }
 0x27c   : > { %p2507_p13 = scmp.ne.s32.totalorder %s2974_s8, %s2506_s7  ;;  %p2511_p2 = scmp.lt.s32.totalorder %s2974_s8, %s3025_s6 }
 0x27d   : > { %p2512_p3 = scmp.lt.s32.totalorder %s2510_s14, %s2506_s7 }
 0x27e   : > { %p2508_p0 = pnand %p2507_p13, %p2640_p4 }
 0x27f   : > { %p2513_p5 = por %p2512_p3, %p2511_p2 }
 0x280   : > { %p2509_p1 = pneg %p2508_p0 }
 0x282   : > { %p2514_p7 = pnand %p2513_p5, %p2509_p1 }
 0x284   : > { %2517 = shalt.err (!%p2514_p7)
}
 0x285   : > { %s2570_s17 = smov 128   ;;  %s2571_s19 = smov 8  }
 0x286   : > { %2369 = dma.vmem_to_hbm [thread:$0]  (%p2640_p4), %s2969_s18, 256, %s2974_s8, %s2978_s9, %s2570_s17, %s2570_s17, %s2571_s19  }
 0x287 PF: > { %p2375_p8 = scmp.ge.s32.totalorder %s2565_s25, 2  ;;  %s1982_s26 = sand.u32 1, %s2549_s21  }
 0x288   : > { %s1983_s27 = scalar_lea.sflag [#allocation4], %s1982_s26 }
 0x289   : > { %p2372_p9 = pnand %p2375_p8, %p2644_p6 }
 0x28b   : > { %p2373_p10 = pneg %p2372_p9 }
 0x28d   : > { %2543 = dma.done.wait (%p2373_p10), %s1983_s27, 256  }
 0x28e   : > { %2545 = vsyncadd (%p2373_p10), %s1983_s27, 4294967040  ;;  %s19_s25 = sadd.s32 1, %s2565_s25   ;;  %s3030_s21 = smov %s2553_s22 }
 0x28f   : > { %p16_p11 = scmp.ge.s32.totalorder %s19_s25, 5   ;;  %s3009_s22 = smov 0  }
 0x290   : > { %s3031_s23 = smov %s2561_s24  ;;  %s3032_s24 = smov %s3034_s28 }
 0x291   :  { %18 = sbr.rel (!%p16_p11) target bundleno = 4 (0x4), region = 107 }
 0x296   :  { %1988 = vsyncpa [#allocation4], 1 }
 0x297   :  { %1990 = vsyncpa [#allocation4 + $0x1], 1 }

</bundles_post_ra>
